<compile_context>
chip_gen: v7x
topology: tpu7x:2x2x1
jax: 0.10.0
libtpu: 0.0.40
codegen_flags: <defaults>
</compile_context>

<pallas_src>
import functools

import jax
import jax.numpy as jnp
from jax.experimental import pallas as pl
from jax.experimental.pallas import tpu as pltpu

BN_EPS = 1e-5


def _round_up(x, m):
    return (x + m - 1) // m * m


def _default_vmem_limit():
    """Per-generation VMEM budget: v5e/v6e (128 MiB phys) vs v7x (64 MiB phys)."""
    try:
        cap = pltpu.get_tpu_info().vmem_capacity_bytes
    except Exception:
        cap = 64 * 1024 * 1024  # conservative (v7x-sized) fallback
    if cap >= 128 * 1024 * 1024:
        return 96 * 1024 * 1024
    return 48 * 1024 * 1024


_VMEM_LIMIT = _default_vmem_limit()


def _decoder_kernel(x1_ref, x2_ref, wa_ref, wb_ref, vec_ref, o_ref):
    """One batch tile.

    x1_ref : (TB, E)   token-0 rows of x1 (compute dtype)
    x2_ref : (TB, E)   token-0 rows of x2 (compute dtype)
    wa_ref : (E, Hp)   fused weight acting on x1 (fc_reduce @ fc_pair1-half, BN folded)
    wb_ref : (E, Hp)   fused weight acting on x2
    vec_ref: (3, Hp)   f32 rows: [fused bias b_all, fc_pair[4] weight, fc_pair[4] bias bcast]
    o_ref  : (1, TB)   lane-dense output row
    """
    b_all = vec_ref[0:1, :]                                  # (1, Hp) f32
    w2 = vec_ref[1:2, :]                                     # (1, Hp) f32
    b2 = vec_ref[2:3, 0:1]                                   # (1, 1)  f32

    # Single fused linear per input (f32 accumulation on the MXU).
    z = (jnp.dot(x1_ref[...], wa_ref[...], preferred_element_type=jnp.float32)
         + jnp.dot(x2_ref[...], wb_ref[...], preferred_element_type=jnp.float32)
         + b_all)                                            # (TB, Hp) f32

    a = jnp.tanh(z)                                          # (TB, Hp) f32

    # Final Linear(H, 1) as a (1,Hp)x(TB,Hp) contraction -> (1, TB) lane-dense row.
    o_ref[...] = jnp.einsum("oh,bh->ob", w2, a,
                            preferred_element_type=jnp.float32) + b2


def prepare_params(params, compute_dtype=jnp.bfloat16):
    """One-time weight prep (f32 fusion, then cast to the MXU compute dtype)."""
    H, _E = params["w_reduce"].shape
    Hp = _round_up(H, 128)
    pad = Hp - H

    # Fold eval-mode BatchNorm:  y = z*s + ((b1 - mean)*s + beta),  s = gamma/sqrt(var+eps)
    s = params["bn_gamma"].astype(jnp.float32) / jnp.sqrt(
        params["bn_var"].astype(jnp.float32) + BN_EPS)                      # (H,)

    wr_t = params["w_reduce"].astype(jnp.float32).T                         # (E, H)
    br = params["b_reduce"].astype(jnp.float32)                             # (H,)
    w1 = params["w_pair1"].astype(jnp.float32)                              # (H, 2H)
    a1 = w1[:, :H].T * s[None, :]                                           # (H, H) acts on h1
    b1m = w1[:, H:].T * s[None, :]                                          # (H, H) acts on h2
    b_fold = (params["b_pair1"] - params["bn_mean"]) * s + params["bn_beta"]

    # Fuse fc_reduce into fc_pair[1] (Dropout is identity in eval mode, no
    # nonlinearity in between):  z = x1_0 @ Wa + x2_0 @ Wb + b_all
    wa = wr_t @ a1                                                          # (E, H)
    wb = wr_t @ b1m                                                         # (E, H)
    b_all = br @ (a1 + b1m) + b_fold                                        # (H,)

    w2 = params["w_pair2"].astype(jnp.float32)[0]                           # (H,)
    b2 = jnp.full((H,), params["b_pair2"][0], jnp.float32)                  # (H,) bcast

    def pad_h(v):
        if v.ndim == 1:
            return jnp.pad(v, (0, pad))
        return jnp.pad(v, ((0, 0), (0, pad)))

    return {
        "wa": pad_h(wa).astype(compute_dtype),                              # (E, Hp)
        "wb": pad_h(wb).astype(compute_dtype),                              # (E, Hp)
        "vecs": jnp.stack([pad_h(b_all), pad_h(w2), pad_h(b2)],
                          axis=0).astype(jnp.float32),                      # (3, Hp)
    }


def _choose_tile(B, E, Hp, itemsize, vmem_limit, tb_max):
    """Largest 128-multiple batch tile that fits the VMEM budget."""
    budget = int(vmem_limit * 0.7)                       # headroom for compiler scratch
    # Resident weights (assume the compiler may hold 2 copies of constant blocks).
    weights = 2 * (2 * E * Hp * itemsize + 3 * Hp * 4)
    # Per-batch-row cost: 2 inputs x 2 pipeline buffers of E, ~3 f32 (tb,Hp)
    # intermediates (z / tanh / epilogue), lane-dense output (negligible).
    per_row = 2 * 2 * E * itemsize + 3 * Hp * 4 + 16
    tb = max(128, (budget - weights) // per_row)
    tb = min(tb, tb_max)
    # Keep >= 2 grid steps when the batch allows it (megacore sharding on v7x;
    # harmless on single-TC v5e/v6e).
    tb = min(tb, _round_up(-(-B // 2), 128))
    tb = max(128, (tb // 128) * 128)
    return tb


@functools.partial(jax.jit, static_argnames=("tb_max",))
def mlp_muformer_decoder(x1, x2, prep, *, tb_max=1024):
    """x1, x2: (B, L, E) float32; prep: output of prepare_params. Returns (B, 1)."""
    B, _L, E = x1.shape
    Hp = prep["wa"].shape[1]
    cdtype = prep["wa"].dtype
    itemsize = jnp.dtype(cdtype).itemsize

    tb = _choose_tile(B, E, Hp, itemsize, _VMEM_LIMIT, tb_max)
    b_pad = _round_up(B, tb)
    grid = b_pad // tb

    # TODO(synk): a fully fused path would DMA the token-0 rows straight from the
    # (B, L, E) HBM arrays (memory_space=pl.ANY + make_async_copy with a strided
    # gather); a size-1 block on the second-to-minor L axis is not expressible
    # under the (8,128) BlockSpec rule, so here the slice + bf16 cast are fused
    # into one XLA copy per input instead (no stack, no f32 duplicate).
    x1_t0 = x1[:, 0, :].astype(cdtype)                       # (B, E)
    x2_t0 = x2[:, 0, :].astype(cdtype)                       # (B, E)
    if b_pad != B:
        x1_t0 = jnp.pad(x1_t0, ((0, b_pad - B), (0, 0)))
        x2_t0 = jnp.pad(x2_t0, ((0, b_pad - B), (0, 0)))

    out = pl.pallas_call(
        _decoder_kernel,
        out_shape=jax.ShapeDtypeStruct((1, b_pad), jnp.float32),
        grid=(grid,),
        in_specs=[
            pl.BlockSpec((tb, E), lambda i: (i, 0)),           # pipelined x1 tile
            pl.BlockSpec((tb, E), lambda i: (i, 0)),           # pipelined x2 tile
            pl.BlockSpec(prep["wa"].shape, lambda i: (0, 0)),  # VMEM-resident
            pl.BlockSpec(prep["wb"].shape, lambda i: (0, 0)),  # VMEM-resident
            pl.BlockSpec(prep["vecs"].shape, lambda i: (0, 0)),
        ],
        out_specs=pl.BlockSpec((1, tb), lambda i: (0, i)),     # lane-dense output row
        compiler_params=pltpu.CompilerParams(
            dimension_semantics=("parallel",),
            vmem_limit_bytes=_VMEM_LIMIT,
        ),
    )(x1_t0, x2_t0, prep["wa"], prep["wb"], prep["vecs"])

    return out[0, :B].reshape(B, 1)


def reference_jax(x1, x2, params):
    """Pure-JAX reference of the PyTorch forward (eval mode), f32 throughout."""
    h1 = x1[:, 0, :] @ params["w_reduce"].T + params["b_reduce"]
    h2 = x2[:, 0, :] @ params["w_reduce"].T + params["b_reduce"]
    h = jnp.concatenate([h1, h2], axis=-1)
    z = h @ params["w_pair1"].T + params["b_pair1"]
    z = (z - params["bn_mean"]) / jnp.sqrt(params["bn_var"] + BN_EPS)
    z = z * params["bn_gamma"] + params["bn_beta"]
    a = jnp.tanh(z)
    return a @ params["w_pair2"].T + params["b_pair2"]


def init_params(key, encoder_dim, hidden_size):
    ks = jax.random.split(key, 8)

    def uni(k, shape, fan_in):
        bound = 1.0 / jnp.sqrt(fan_in)
        return jax.random.uniform(k, shape, jnp.float32, -bound, bound)

    return {
        # PyTorch Linear: weight (out, in), bias (out,)
        "w_reduce": uni(ks[0], (hidden_size, encoder_dim), encoder_dim),
        "b_reduce": uni(ks[1], (hidden_size,), encoder_dim),
        "w_pair1": uni(ks[2], (hidden_size, 2 * hidden_size), 2 * hidden_size),
        "b_pair1": uni(ks[3], (hidden_size,), 2 * hidden_size),
        "bn_gamma": jnp.ones((hidden_size,), jnp.float32),
        "bn_beta": jnp.zeros((hidden_size,), jnp.float32),
        # non-trivial running stats to exercise the folded-BN path
        "bn_mean": 0.1 * jax.random.normal(ks[4], (hidden_size,), jnp.float32),
        "bn_var": 1.0 + 0.1 * jax.random.uniform(ks[5], (hidden_size,), jnp.float32),
        "w_pair2": uni(ks[6], (1, hidden_size), hidden_size),
        "b_pair2": uni(ks[7], (1,), hidden_size),
    }


# TODO(synk): nn.Dropout(p=0.1) is identity in eval mode; training-mode dropout
# (stochastic masking) is intentionally not implemented in this kernel.

if __name__ == "__main__":
    root_key = jax.random.PRNGKey(0)

    def run_case(B, L, E, H, tb_max, compute_dtype, atol, rtol):
        k1, k2, kp = jax.random.split(jax.random.fold_in(root_key, B * 131 + H), 3)
        x1 = jax.random.normal(k1, (B, L, E), jnp.float32)
        x2 = jax.random.normal(k2, (B, L, E), jnp.float32)
        params = init_params(kp, E, H)
        prep = prepare_params(params, compute_dtype=compute_dtype)

        out = jax.block_until_ready(mlp_muformer_decoder(x1, x2, prep, tb_max=tb_max))
        ref = reference_jax(x1, x2, params)

        assert out.shape == (B, 1), out.shape
        err = float(jnp.max(jnp.abs(out - ref)))
        assert jnp.allclose(out, ref, atol=atol, rtol=rtol), err

    # Exact-semantics check (f32 compute, single tile, grid=1).
    run_case(B=4, L=8, E=32, H=32, tb_max=1024,
             compute_dtype=jnp.float32, atol=2e-5, rtol=1e-4)
    # Multi-tile f32 case exercising batch tiling, padding and the lane-dense output.
    run_case(B=300, L=8, E=32, H=32, tb_max=128,
             compute_dtype=jnp.float32, atol=2e-5, rtol=1e-4)
    # Performance configuration: bf16 MXU inputs, f32 accumulation (looser tolerance).
    run_case(B=300, L=8, E=32, H=32, tb_max=1024,
             compute_dtype=jnp.bfloat16, atol=3e-2, rtol=3e-2)

    print("KERNEL_OK")
</pallas_src>

<mosaic_0001>
module attributes {stable_mosaic.version = 11 : i64} {
  func.func @_decoder_kernel(%arg0: i32, %arg1: memref<128x32xf32, #tpu.memory_space<vmem>>, %arg2: memref<128x32xf32, #tpu.memory_space<vmem>>, %arg3: memref<32x128xf32, #tpu.memory_space<vmem>>, %arg4: memref<32x128xf32, #tpu.memory_space<vmem>>, %arg5: memref<3x128xf32, #tpu.memory_space<vmem>>, %arg6: memref<1x128xf32, #tpu.memory_space<vmem>>) attributes {dimension_semantics = [#tpu.dimension_semantics<parallel>], iteration_bounds = array<i64: 1>, scalar_prefetch = 0 : i64, scratch_operands = 0 : i64, tpu.core_type = #tpu.core_type<tc>, window_params = [{transform_indices = @transform_0, window_bounds = array<i64: 128, 32>}, {transform_indices = @transform_1, window_bounds = array<i64: 128, 32>}, {pipeline_mode = #tpu.pipeline_mode<synchronous>, transform_indices = @transform_2, window_bounds = array<i64: 32, 128>}, {pipeline_mode = #tpu.pipeline_mode<synchronous>, transform_indices = @transform_3, window_bounds = array<i64: 32, 128>}, {pipeline_mode = #tpu.pipeline_mode<synchronous>, transform_indices = @transform_4, window_bounds = array<i64: 3, 128>}, {transform_indices = @transform_5, window_bounds = array<i64: 1, 128>}]} {
    %c0 = arith.constant 0 : index
    %c0_0 = arith.constant 0 : index
    %0 = vector.load %arg5[%c0, %c0_0] : memref<3x128xf32, #tpu.memory_space<vmem>>, vector<1x128xf32>
    %c1 = arith.constant 1 : index
    %c0_1 = arith.constant 0 : index
    %1 = vector.load %arg5[%c1, %c0_1] : memref<3x128xf32, #tpu.memory_space<vmem>>, vector<1x128xf32>
    %c2 = arith.constant 2 : index
    %c0_2 = arith.constant 0 : index
    %2 = vector.load %arg5[%c2, %c0_2] : memref<3x128xf32, #tpu.memory_space<vmem>>, vector<1x1xf32>
    %c0_3 = arith.constant 0 : index
    %c0_4 = arith.constant 0 : index
    %3 = vector.load %arg1[%c0_3, %c0_4] : memref<128x32xf32, #tpu.memory_space<vmem>>, vector<128x32xf32>
    %c0_5 = arith.constant 0 : index
    %c0_6 = arith.constant 0 : index
    %4 = vector.load %arg3[%c0_5, %c0_6] : memref<32x128xf32, #tpu.memory_space<vmem>>, vector<32x128xf32>
    %cst = arith.constant dense<0.000000e+00> : vector<128x128xf32>
    %5 = tpu.matmul %3, %4, %cst {dimension_numbers = #tpu.dot_dimension_numbers<[1], [0], [0], [1], [0, 0, 1, 1], [], []>} : vector<128x32xf32>, vector<32x128xf32>, vector<128x128xf32> -> vector<128x128xf32>
    %c0_7 = arith.constant 0 : index
    %c0_8 = arith.constant 0 : index
    %6 = vector.load %arg2[%c0_7, %c0_8] : memref<128x32xf32, #tpu.memory_space<vmem>>, vector<128x32xf32>
    %c0_9 = arith.constant 0 : index
    %c0_10 = arith.constant 0 : index
    %7 = vector.load %arg4[%c0_9, %c0_10] : memref<32x128xf32, #tpu.memory_space<vmem>>, vector<32x128xf32>
    %cst_11 = arith.constant dense<0.000000e+00> : vector<128x128xf32>
    %8 = tpu.matmul %6, %7, %cst_11 {dimension_numbers = #tpu.dot_dimension_numbers<[1], [0], [0], [1], [0, 0, 1, 1], [], []>} : vector<128x32xf32>, vector<32x128xf32>, vector<128x128xf32> -> vector<128x128xf32>
    %9 = arith.addf %5, %8 : vector<128x128xf32>
    %10 = vector.broadcast %0 : vector<1x128xf32> to vector<128x128xf32>
    %11 = arith.addf %9, %10 : vector<128x128xf32>
    %12 = math.tanh %11 : vector<128x128xf32>
    "tpu.trace_start"() <{level = 10 : i32, message = "oh,bh->ob"}> : () -> ()
    %cst_12 = arith.constant dense<0.000000e+00> : vector<1x128xf32>
    %13 = tpu.matmul %1, %12, %cst_12 {dimension_numbers = #tpu.dot_dimension_numbers<[1], [1], [0], [0], [0, 0, 1, 0], [], []>} : vector<1x128xf32>, vector<128x128xf32>, vector<1x128xf32> -> vector<1x128xf32>
    "tpu.trace_stop"() : () -> ()
    %14 = vector.broadcast %2 : vector<1x1xf32> to vector<1x128xf32>
    %15 = arith.addf %13, %14 : vector<1x128xf32>
    %c0_13 = arith.constant 0 : index
    %c0_14 = arith.constant 0 : index
    %16 = vector.load %arg6[%c0_13, %c0_14] : memref<1x128xf32, #tpu.memory_space<vmem>>, vector<1x128xf32>
    tpu.vector_store %arg6[%c0_13, %c0_14], %15 {strides = array<i32>} : memref<1x128xf32, #tpu.memory_space<vmem>>, vector<1x128xf32>,
    return
  }
  func.func @transform_0(%arg0: i32) -> (i32, i32) {
    %c0_i32 = arith.constant 0 : i32
    %c0_i32_0 = arith.constant 0 : i32
    return %arg0, %c0_i32 : i32, i32
  }
  func.func @transform_1(%arg0: i32) -> (i32, i32) {
    %c0_i32 = arith.constant 0 : i32
    %c0_i32_0 = arith.constant 0 : i32
    return %arg0, %c0_i32 : i32, i32
  }
  func.func @transform_2(%arg0: i32) -> (i32, i32) {
    %c0_i32 = arith.constant 0 : i32
    %c0_i32_0 = arith.constant 0 : i32
    %c0_i32_1 = arith.constant 0 : i32
    return %c0_i32, %c0_i32_0 : i32, i32
  }
  func.func @transform_3(%arg0: i32) -> (i32, i32) {
    %c0_i32 = arith.constant 0 : i32
    %c0_i32_0 = arith.constant 0 : i32
    %c0_i32_1 = arith.constant 0 : i32
    return %c0_i32, %c0_i32_0 : i32, i32
  }
  func.func @transform_4(%arg0: i32) -> (i32, i32) {
    %c0_i32 = arith.constant 0 : i32
    %c0_i32_0 = arith.constant 0 : i32
    %c0_i32_1 = arith.constant 0 : i32
    return %c0_i32, %c0_i32_0 : i32, i32
  }
  func.func @transform_5(%arg0: i32) -> (i32, i32) {
    %c0_i32 = arith.constant 0 : i32
    %c0_i32_0 = arith.constant 0 : i32
    return %c0_i32, %arg0 : i32, i32
  }
}

</mosaic_0001>

<bundles_post_ra>
// kernel: mlp_muformer_decoder.1
= control target key start
LH: loop header
LB: loop body
LE: loop exit
PB: predicated region body
PF: predicated region fallthrough
CT: control target
= control target key end

     0   :  { %vm63_vm0 = vcmask 261120   ;;  %v848_v44 = vmov 0.0|0.0   ;;  %vm849_vm1 = vmmov 0   ;;  %v850_v45 = vmov 0.0   ;;  %s1072_s3 = inlined_call_operand.vmem [shape: f32[32,128], index: 3, kind: input, shape index: {}]   ;;  %s1073_s1 = inlined_call_operand.vmem [shape: f32[128,32], index: 1, kind: input, shape index: {}]   ;;  %s1074_s2 = inlined_call_operand.vmem [shape: f32[32,128], index: 2, kind: input, shape index: {}]   ;;  %s1075_s0 = inlined_call_operand.vmem [shape: f32[128,32], index: 0, kind: input, shape index: {}]   ;;  %s1076_s4 = inlined_call_operand.vmem [shape: f32[3,128], index: 4, kind: input, shape index: {}]   ;;  %s1077_s5 = inlined_call_operand.vmem [shape: f32[1,128], index: 5, kind: output, shape index: {}]  }
   0x1   :  { %v59_v0 = vld [vmem:[%s1072_s3] sm:$0xff]  ;;  %v60_v1 = vld [vmem:[%s1072_s3 + $0x8] sm:$0xff]  ;;  %v61_v2 = vld [vmem:[%s1072_s3 + $0x10] sm:$0xff]  ;;  %771 = vmatprep.subr.bf16.mxu1 %v848_v44  ;;  %752 = vmatprep.mubr.msk.f32.mxu1 %vm849_vm1, %v850_v45  ;;  %v851_v47 = vmov 0  }
   0x2   :  { %v755_v3 = vpack.c.bf16 %v60_v1, %v59_v0  ;;  %v62_v4 = vld [vmem:[%s1072_s3 + $0x18] sm:$0xff]  ;;  %v43_v5 = vld [vmem:[%s1073_s1] sm:$0xff]  ;;  %v40_v8 = vld [vmem:[%s1074_s2 + $0x8] sm:$0xff]  ;;  %815 = vset.pattern.permute.xlu0 %v851_v47 }
   0x3   :  { %v759_v6 = vpack.c.bf16 %v62_v4, %v61_v2  ;;  %664 = vmatprep.mubr.msk.f32.mxu0 %vm63_vm0, %v43_v5  ;;  %v39_v7 = vld [vmem:[%s1074_s2] sm:$0xff]  ;;  %v41_v10 = vld [vmem:[%s1074_s2 + $0x10] sm:$0xff]  ;;  %v42_v11 = vld [vmem:[%s1074_s2 + $0x18] sm:$0xff] }
   0x4   :  { %756 = vmatprep.subr.bf16.mxu0 %v755_v3  ;;  %v763_v9 = vpack.c.bf16 %v40_v8, %v39_v7  ;;  %v44_v12 = vld [vmem:[%s1073_s1 + $0x8] sm:$0xff]  ;;  %v45_v13 = vld [vmem:[%s1073_s1 + $0x10] sm:$0xff]  ;;  %v767_v14 = vpack.c.bf16 %v42_v11, %v41_v10  ;;  %v46_v15 = vld [vmem:[%s1073_s1 + $0x18] sm:$0xff] }
   0x5   :  { %758 = vmatpush3.bf16.msra.mxu0 %v755_v3  ;;  %v47_v16 = vld [vmem:[%s1073_s1 + $0x20] sm:$0xff]  ;;  %v48_v17 = vld [vmem:[%s1073_s1 + $0x28] sm:$0xff]  ;;  %v49_v18 = vld [vmem:[%s1073_s1 + $0x30] sm:$0xff] }
   0x6   :  { %760 = vmatprep.subr.bf16.mxu0 %v759_v6  ;;  %v50_v19 = vld [vmem:[%s1073_s1 + $0x38] sm:$0xff]  ;;  %v51_v20 = vld [vmem:[%s1073_s1 + $0x40] sm:$0xff]  ;;  %v52_v21 = vld [vmem:[%s1073_s1 + $0x48] sm:$0xff] }
   0x7   :  { %v53_v22 = vld [vmem:[%s1073_s1 + $0x50] sm:$0xff]  ;;  %v54_v23 = vld [vmem:[%s1073_s1 + $0x58] sm:$0xff]  ;;  %v55_v24 = vld [vmem:[%s1073_s1 + $0x60] sm:$0xff] }
   0x8   :  { %v56_v25 = vld [vmem:[%s1073_s1 + $0x68] sm:$0xff]  ;;  %v57_v26 = vld [vmem:[%s1073_s1 + $0x70] sm:$0xff]  ;;  %v58_v27 = vld [vmem:[%s1073_s1 + $0x78] sm:$0xff] }
   0x9   :  { %762 = vmatpush3.bf16.msra.mxu0 %v759_v6  ;;  %v23_v28 = vld [vmem:[%s1075_s0] sm:$0xff]  ;;  %v24_v29 = vld [vmem:[%s1075_s0 + $0x8] sm:$0xff]  ;;  %v25_v30 = vld [vmem:[%s1075_s0 + $0x10] sm:$0xff] }
   0xa   :  { %764 = vmatprep.subr.bf16.mxu0 %v763_v9  ;;  %v26_v31 = vld [vmem:[%s1075_s0 + $0x18] sm:$0xff]  ;;  %v27_v32 = vld [vmem:[%s1075_s0 + $0x20] sm:$0xff]  ;;  %v28_v33 = vld [vmem:[%s1075_s0 + $0x28] sm:$0xff] }
   0xb   :  { %v29_v34 = vld [vmem:[%s1075_s0 + $0x30] sm:$0xff]  ;;  %v30_v35 = vld [vmem:[%s1075_s0 + $0x38] sm:$0xff]  ;;  %v31_v36 = vld [vmem:[%s1075_s0 + $0x40] sm:$0xff] }
   0xc   :  { %665 = vmatmul.mubr.msk.f32.vlgmr.msra.gmra.mrb[0].mxu0 %vm63_vm0, %v44_v12  ;;  %v32_v37 = vld [vmem:[%s1075_s0 + $0x48] sm:$0xff]  ;;  %v33_v38 = vld [vmem:[%s1075_s0 + $0x50] sm:$0xff]  ;;  %v34_v39 = vld [vmem:[%s1075_s0 + $0x58] sm:$0xff] }
   0xd   :  { %766 = vmatpush3.bf16.msra.mxu0 %v763_v9  ;;  %667 = vmatprep.mubr.msk.f32.mxu0 %vm63_vm0, %v45_v13  ;;  %v35_v40 = vld [vmem:[%s1075_s0 + $0x60] sm:$0xff]  ;;  %v36_v41 = vld [vmem:[%s1075_s0 + $0x68] sm:$0xff]  ;;  %v37_v42 = vld [vmem:[%s1075_s0 + $0x70] sm:$0xff] }
   0xe   :  { %768 = vmatprep.subr.bf16.mxu0 %v767_v14  ;;  %v38_v43 = vld [vmem:[%s1075_s0 + $0x78] sm:$0xff]  ;;  %v22_v46 = vld [vmem:[%s1076_s4 + $0x2] sm:$0x1]  ;;  %v1041_v48 = vld [vmem:[%s1076_s4] ss:$0 sm:$0xff] }
   0xf   :  { %488 = vperm.xlu0 %815, %v22_v46  }
  0x10   :  { %668 = vmatmul.mubr.msk.f32.gmra.mrb[2].mxu0 %vm63_vm0, %v46_v15 }
  0x11   :  { %670 = vmatprep.mubr.msk.f32.mxu0 %vm63_vm0, %v47_v16  ;;  %770 = vmatpush3.bf16.msra.mxu0 %v767_v14 }
  0x14   :  { %671 = vmatmul.mubr.msk.f32.gmra.mrb[4].mxu0 %vm63_vm0, %v48_v17 }
  0x15   :  { %673 = vmatprep.mubr.msk.f32.mxu0 %vm63_vm0, %v49_v18 }
  0x18   :  { %674 = vmatmul.mubr.msk.f32.gmra.mrb[6].mxu0 %vm63_vm0, %v50_v19 }
  0x19   :  { %676 = vmatprep.mubr.msk.f32.mxu0 %vm63_vm0, %v51_v20 }
  0x1c   :  { %677 = vmatmul.mubr.msk.f32.gmra.mrb[8].mxu0 %vm63_vm0, %v52_v21 }
  0x1d   :  { %679 = vmatprep.mubr.msk.f32.mxu0 %vm63_vm0, %v53_v22 }
  0x20   :  { %680 = vmatmul.mubr.msk.f32.gmra.mrb[10].mxu0 %vm63_vm0, %v54_v23 }
  0x21   :  { %682 = vmatprep.mubr.msk.f32.mxu0 %vm63_vm0, %v55_v24 }
  0x24   :  { %683 = vmatmul.mubr.msk.f32.gmra.mrb[12].mxu0 %vm63_vm0, %v56_v25 }
  0x25   :  { %685 = vmatprep.mubr.msk.f32.mxu0 %vm63_vm0, %v57_v26 }
  0x28   :  { %686 = vmatmul.mubr.msk.f32.gmra.mrb[14].mxu0 %vm63_vm0, %v58_v27 }
  0x29   :  { %696 = vmatprep.mubr.msk.f32.mxu0 %vm63_vm0, %v23_v28 }
  0x2c   :  { %697 = vmatmul.mubr.msk.f32.vlgmr.msra.gmra.mrb[0].mxu0 %vm63_vm0, %v24_v29 }
  0x2d   :  { %699 = vmatprep.mubr.msk.f32.mxu0 %vm63_vm0, %v25_v30 }
  0x30   :  { %700 = vmatmul.mubr.msk.f32.gmra.mrb[2].mxu0 %vm63_vm0, %v26_v31 }
  0x31   :  { %702 = vmatprep.mubr.msk.f32.mxu0 %vm63_vm0, %v27_v32 }
  0x34   :  { %703 = vmatmul.mubr.msk.f32.gmra.mrb[4].mxu0 %vm63_vm0, %v28_v33 }
  0x35   :  { %705 = vmatprep.mubr.msk.f32.mxu0 %vm63_vm0, %v29_v34 }
  0x38   :  { %706 = vmatmul.mubr.msk.f32.gmra.mrb[6].mxu0 %vm63_vm0, %v30_v35 }
  0x39   :  { %708 = vmatprep.mubr.msk.f32.mxu0 %vm63_vm0, %v31_v36 }
  0x3c   :  { %709 = vmatmul.mubr.msk.f32.gmra.mrb[8].mxu0 %vm63_vm0, %v32_v37 }
  0x3d   :  { %711 = vmatprep.mubr.msk.f32.mxu0 %vm63_vm0, %v33_v38 }
  0x40   :  { %712 = vmatmul.mubr.msk.f32.gmra.mrb[10].mxu0 %vm63_vm0, %v34_v39 }
  0x41   :  { %714 = vmatprep.mubr.msk.f32.mxu0 %vm63_vm0, %v35_v40 }
  0x44   :  { %715 = vmatmul.mubr.msk.f32.gmra.mrb[12].mxu0 %vm63_vm0, %v36_v41  ;;  %v21_v41 = vld [vmem:[%s1076_s4 + $0x1] sm:$0x1] }
  0x45   :  { %717 = vmatprep.mubr.msk.f32.mxu0 %vm63_vm0, %v37_v42 }
  0x48   :  { %718 = vmatmul.mubr.msk.f32.gmra.mrb[14].mxu0 %vm63_vm0, %v38_v43 }
  0x8e   :  { %v489_v42 = vpop.permute.xlu0 %488 }
  0xff   :  { %v698_v49 = vpop.f32.mrb[0].mxu0 }
 0x100   :  { %v455_v50 = vadd.f32 %v698_v49, %v1041_v48  ;;  %v371_v51 = vpop.f32.mrb[1].mxu0 }
 0x101   :  { %v454_v52 = vadd.f32 %v1041_v48, %v371_v51 }
 0x102   :  { %816 = vtanh.f32 %v455_v50 }
 0x103   :  { %818 = vtanh.f32 %v454_v52  ;;  %v701_v53 = vpop.f32.mrb[2].mxu0 }
 0x104   :  { %v457_v54 = vadd.f32 %v701_v53, %v1041_v48  ;;  %v381_v55 = vpop.f32.mrb[3].mxu0 }
 0x105   :  { %v456_v56 = vadd.f32 %v1041_v48, %v381_v55 }
 0x106   :  { %820 = vtanh.f32 %v457_v54 }
 0x107   :  { %822 = vtanh.f32 %v456_v56  ;;  %v704_v57 = vpop.f32.mrb[4].mxu0 }
 0x108   :  { %v459_v58 = vadd.f32 %v704_v57, %v1041_v48  ;;  %v391_v59 = vpop.f32.mrb[5].mxu0 }
 0x109   :  { %v458_v60 = vadd.f32 %v1041_v48, %v391_v59 }
 0x10a   :  { %824 = vtanh.f32 %v459_v58 }
 0x10b   :  { %826 = vtanh.f32 %v458_v60  ;;  %v707_v61 = vpop.f32.mrb[6].mxu0 }
 0x10c   :  { %v817_v62 = vpop.eup %816  ;;  %v461_v63 = vadd.f32 %v707_v61, %v1041_v48  ;;  %v401_v0 = vpop.f32.mrb[7].mxu0 }
 0x10d   :  { %v819_v1 = vpop.eup %818  ;;  %v460_v2 = vadd.f32 %v1041_v48, %v401_v0 }
 0x10e   :  { %828 = vtanh.f32 %v461_v63  ;;  %v772_v3 = vpack.c.bf16 %v817_v62, %v819_v1 }
 0x10f   :  { %830 = vtanh.f32 %v460_v2  ;;  %v710_v4 = vpop.f32.mrb[8].mxu0 }
 0x110   :  { %v821_v5 = vpop.eup %820  ;;  %v463_v6 = vadd.f32 %v710_v4, %v1041_v48  ;;  %v411_v7 = vpop.f32.mrb[9].mxu0  ;;  %773 = vmatpush3.bf16.xpose.msra.mxu1 %v772_v3 }
 0x111   :  { %v823_v8 = vpop.eup %822  ;;  %v462_v9 = vadd.f32 %v1041_v48, %v411_v7  ;;  %774 = vmatprep.subr.bf16.mxu1 %v848_v44 }
 0x112   :  { %832 = vtanh.f32 %v463_v6  ;;  %v775_v10 = vpack.c.bf16 %v821_v5, %v823_v8 }
 0x113   :  { %834 = vtanh.f32 %v462_v9  ;;  %v713_v11 = vpop.f32.mrb[10].mxu0 }
 0x114   :  { %v825_v12 = vpop.eup %824  ;;  %v465_v13 = vadd.f32 %v713_v11, %v1041_v48  ;;  %v421_v14 = vpop.f32.mrb[11].mxu0 }
 0x115   :  { %v827_v15 = vpop.eup %826  ;;  %v464_v16 = vadd.f32 %v1041_v48, %v421_v14 }
 0x116   :  { %836 = vtanh.f32 %v465_v13  ;;  %v778_v17 = vpack.c.bf16 %v825_v12, %v827_v15 }
 0x117   :  { %838 = vtanh.f32 %v464_v16  ;;  %v716_v18 = vpop.f32.mrb[12].mxu0 }
 0x118   :  { %v829_v19 = vpop.eup %828  ;;  %v467_v20 = vadd.f32 %v716_v18, %v1041_v48  ;;  %v431_v21 = vpop.f32.mrb[13].mxu0  ;;  %776 = vmatpush3.bf16.xpose.msra.mxu1 %v775_v10 }
 0x119   :  { %v831_v22 = vpop.eup %830  ;;  %v466_v23 = vadd.f32 %v1041_v48, %v431_v21  ;;  %777 = vmatprep.subr.bf16.mxu1 %v848_v44 }
 0x11a   :  { %840 = vtanh.f32 %v467_v20  ;;  %v781_v24 = vpack.c.bf16 %v829_v19, %v831_v22 }
 0x11b   :  { %842 = vtanh.f32 %v466_v23  ;;  %v719_v25 = vpop.f32.mrb[14].mxu0 }
 0x11c   :  { %v833_v26 = vpop.eup %832  ;;  %v469_v27 = vadd.f32 %v719_v25, %v1041_v48  ;;  %v441_v28 = vpop.f32.mrb[15].mxu0 }
 0x11d   :  { %v835_v29 = vpop.eup %834  ;;  %v468_v30 = vadd.f32 %v1041_v48, %v441_v28 }
 0x11e   :  { %844 = vtanh.f32 %v469_v27  ;;  %v784_v31 = vpack.c.bf16 %v833_v26, %v835_v29 }
 0x11f   :  { %846 = vtanh.f32 %v468_v30 }
 0x120   :  { %v837_v32 = vpop.eup %836  ;;  %779 = vmatpush3.bf16.xpose.msra.mxu1 %v778_v17 }
 0x121   :  { %v839_v33 = vpop.eup %838  ;;  %780 = vmatprep.subr.bf16.mxu1 %v848_v44 }
 0x122   :  { %v787_v34 = vpack.c.bf16 %v837_v32, %v839_v33 }
 0x124   :  { %v841_v35 = vpop.eup %840 }
 0x125   :  { %v843_v36 = vpop.eup %842 }
 0x126   :  { %v790_v37 = vpack.c.bf16 %v841_v35, %v843_v36 }
 0x128   :  { %v845_v38 = vpop.eup %844  ;;  %782 = vmatpush3.bf16.xpose.msra.mxu1 %v781_v24 }
 0x129   :  { %v847_v39 = vpop.eup %846  ;;  %783 = vmatprep.subr.bf16.mxu1 %v848_v44 }
 0x12a   :  { %v793_v40 = vpack.c.bf16 %v845_v38, %v847_v39 }
 0x130   :  { %785 = vmatpush3.bf16.xpose.msra.mxu1 %v784_v31 }
 0x131   :  { %786 = vmatprep.subr.bf16.mxu1 %v848_v44 }
 0x138   :  { %788 = vmatpush3.bf16.xpose.msra.mxu1 %v787_v34 }
 0x139   :  { %789 = vmatprep.subr.bf16.mxu1 %v848_v44 }
 0x140   :  { %791 = vmatpush3.bf16.xpose.msra.mxu1 %v790_v37 }
 0x141   :  { %792 = vmatprep.subr.bf16.mxu1 %v848_v44 }
 0x148   :  { %794 = vmatpush3.bf16.xpose.msra.mxu1 %v793_v40 }
 0x14f   :  { %753 = vmatmul.mubr.f32.vlgmr.msra.gmra.mrb[0].mxu1 %v21_v41 }
 0x222   :  { %v557_v43 = vpop.f32.mrb[0].mxu1 }
 0x223   :  { %v558_v45 = vadd.f32 %v557_v43, %v489_v42  ;;  %v754_v46 = vpop.f32.mrb[1].mxu1 }
 0x225   :  { %561 = vst [vmem:[%s1077_s5] sm:$0x1] %v558_v45 }

</bundles_post_ra>
